<compile_context>
chip_gen: v7x
topology: tpu7x:2x2x1
jax: 0.10.0
libtpu: 0.0.40
codegen_flags: <defaults>
</compile_context>

<pallas_src>
import math
import jax
import jax.numpy as jnp
from jax import lax
from jax.experimental import pallas as pl
from jax.experimental.pallas import tpu as pltpu


# ----------------------------- in-kernel helpers ------------------------------

def _bf16(a):
    return a.astype(jnp.bfloat16)


def _mxu(a, b):
    """bf16-operand MXU matmul with f32 accumulation."""
    return jnp.dot(_bf16(a), _bf16(b), preferred_element_type=jnp.float32)


def _layer_norm(x, gamma, beta, eps=1e-5):
    mu = jnp.mean(x, axis=-1, keepdims=True)
    var = jnp.mean((x - mu) ** 2, axis=-1, keepdims=True)
    return (x - mu) * lax.rsqrt(var + eps) * gamma + beta


def _gelu_tanh(x):
    c = math.sqrt(2.0 / math.pi)
    return 0.5 * x * (1.0 + jnp.tanh(c * (x + 0.044715 * x * x * x)))


def _softmax_last_approx(x):
    # exp and the denominator reciprocal both go to the EUP slot.
    m = jnp.max(x, axis=-1, keepdims=True)
    e = jnp.exp(x - m)
    return e * pl.reciprocal(jnp.sum(e, axis=-1, keepdims=True), approx=True)


def _softmax_last_exact(x):
    m = jnp.max(x, axis=-1, keepdims=True)
    e = jnp.exp(x - m)
    return e / jnp.sum(e, axis=-1, keepdims=True)


def _log_softmax_last(x):
    m = jnp.max(x, axis=-1, keepdims=True)
    lse = m + jnp.log(jnp.sum(jnp.exp(x - m), axis=-1, keepdims=True))
    return x - lse


# ----------------------------- per-batch fused kernel --------------------------

def fused_forward_kernel(labels_ref,                      # SMEM (B,) int32
                         x_ref, mask_ref,                 # (S,H) f32, (1,S) f32
                         wqkv_ref, wo_ref, w1_ref, w2_ref,  # bf16 weights
                         wp_ref, wc_ref,
                         vec_ref,                         # (9, max(H,F)) f32
                         probs_ref, wnll_ref, wsum_ref):  # (1,L) (1,1) (1,1)
    b = pl.program_id(0)
    S, H = x_ref.shape
    Fd = w1_ref.shape[1]
    L = probs_ref.shape[-1]

    # Packed small vectors: one slab instead of nine padded (8,128) tiles.
    b1 = vec_ref[0:1, :Fd]
    b2 = vec_ref[1:2, :H]
    g1 = vec_ref[2:3, :H]
    be1 = vec_ref[3:4, :H]
    g2 = vec_ref[4:5, :H]
    be2 = vec_ref[5:6, :H]
    bp = vec_ref[6:7, :H]
    bc = vec_ref[7:8, :L]
    cw = vec_ref[8:9, :L]

    x = x_ref[...]                                        # (S, H) f32 embeddings

    # ---- fused QKV projection: one (H, 3H) bf16 matmul -----------------------
    qkv = _mxu(x, wqkv_ref[...])                          # (S, 3H) f32
    q = qkv[:, 0:H]
    k = qkv[:, H:2 * H]
    v = qkv[:, 2 * H:3 * H]

    # ---- single-batch attention with (1,S) key mask ---------------------------
    # TODO(synk): if Mosaic inserts a vxpose of k at real sizes, store the Wk
    # slice of the fused weight pre-transposed instead.
    scores = lax.dot_general(_bf16(q), _bf16(k),
                             (((1,), (1,)), ((), ())),
                             preferred_element_type=jnp.float32)   # (S, S) f32
    scores = scores * (1.0 / math.sqrt(H))
    scores = scores + (mask_ref[...] - 1.0) * 1e9         # mask bias kept in f32
    attn = _softmax_last_approx(scores)                   # (S, S)

    ctx = _mxu(attn, v)
    ctx = _mxu(ctx, wo_ref[...])
    h = _layer_norm(x + ctx, g1, be1)                     # f32 elementwise

    ff = _gelu_tanh(_mxu(h, w1_ref[...]) + b1)
    ff = _mxu(ff, w2_ref[...]) + b2
    h2 = _layer_norm(h + ff, g2, be2)

    # ---- CLS token: direct row slice (no selection matmul) --------------------
    cls = h2[0:1, :]                                      # (1, H)
    pooled = jnp.tanh(_mxu(cls, wp_ref[...]) + bp)        # (1, H)

    # ---- classifier head + softmax --------------------------------------------
    logits = _mxu(pooled, wc_ref[...]) + bc               # (1, L)
    probs = _softmax_last_exact(logits)
    probs_ref[...] = probs

    # ---- weighted CE applied to `probs` (double softmax, as in the module) ----
    lsm = _log_softmax_last(probs)
    lab = labels_ref[b]                                   # SMEM scalar
    classes = lax.broadcasted_iota(jnp.int32, (1, L), 1)
    onehot = (classes == lab).astype(jnp.float32)         # (1, L)
    nll = -jnp.sum(onehot * lsm, axis=1, keepdims=True)   # (1, 1)
    w = jnp.sum(onehot * cw, axis=1, keepdims=True)       # (1, 1)
    wnll_ref[...] = w * nll
    wsum_ref[...] = w


# ----------------------------- wrapper -----------------------------------------

def forward(packed, input_ids, attention_mask, labels):
    B, S = input_ids.shape
    H = packed["wo"].shape[0]
    Fd = packed["w1"].shape[1]
    L = packed["wc"].shape[1]
    W = packed["vec"].shape[1]

    # Embedding lookup as an XLA gather (pure memory op; keeps the V*H table
    # out of VMEM and removes the BS*V*H one-hot matmul).
    x_emb = jnp.take(packed["emb"], input_ids, axis=0).astype(jnp.float32)  # (B,S,H)
    mask3 = attention_mask.reshape(B, 1, S).astype(jnp.float32)
    labels_i32 = labels.reshape(B).astype(jnp.int32)

    def full2d(shape):
        return pl.BlockSpec(shape, lambda b: (0,) * len(shape))

    flops = 2 * B * (S * H * 3 * H + 2 * S * S * H + S * H * H
                     + 2 * S * H * Fd + H * H + H * L)
    transcendentals = B * (S * S + S * Fd + H + 4 * L)
    bytes_accessed = (x_emb.size * 4 + mask3.size * 4 + labels_i32.size * 4
                      + sum(int(packed[k].size) * 2
                            for k in ("wqkv", "wo", "w1", "w2", "wp", "wc"))
                      + packed["vec"].size * 4 + B * (L + 2) * 4)

    probs3, wnll, wsum = pl.pallas_call(
        fused_forward_kernel,
        grid=(B,),
        in_specs=[
            pl.BlockSpec(memory_space=pltpu.MemorySpace.SMEM),       # labels
            pl.BlockSpec((None, S, H), lambda b: (b, 0, 0)),         # x_emb
            pl.BlockSpec((None, 1, S), lambda b: (b, 0, 0)),         # mask
            full2d((H, 3 * H)),                                      # wqkv (bf16)
            full2d((H, H)),                                          # wo
            full2d((H, Fd)),                                         # w1
            full2d((Fd, H)),                                         # w2
            full2d((H, H)),                                          # wp
            full2d((H, L)),                                          # wc
            full2d((9, W)),                                          # vec slab
        ],
        out_specs=(
            pl.BlockSpec((None, 1, L), lambda b: (b, 0, 0)),
            pl.BlockSpec((None, 1, 1), lambda b: (b, 0, 0)),
            pl.BlockSpec((None, 1, 1), lambda b: (b, 0, 0)),
        ),
        out_shape=(
            jax.ShapeDtypeStruct((B, 1, L), jnp.float32),
            jax.ShapeDtypeStruct((B, 1, 1), jnp.float32),
            jax.ShapeDtypeStruct((B, 1, 1), jnp.float32),
        ),
        compiler_params=pltpu.CompilerParams(
            dimension_semantics=("parallel",),
            vmem_limit_bytes=32 * 1024 * 1024),
        cost_estimate=pl.CostEstimate(flops=flops,
                                      transcendentals=transcendentals,
                                      bytes_accessed=bytes_accessed),
    )(labels_i32, x_emb, mask3,
      packed["wqkv"], packed["wo"], packed["w1"], packed["w2"],
      packed["wp"], packed["wc"], packed["vec"])

    probs = probs3.reshape(B, L)
    # Final weighted-mean reduction across the parallel grid axis (two scalar
    # sums) done in XLA.
    loss = jnp.sum(wnll) / jnp.sum(wsum)
    return {"loss": loss, "logits": probs}


def pack_params(p):
    """Fuse QKV, cast large weights to bf16 once, pack the nine small (1,.)
    vectors into a single f32 slab."""
    H = p["wo"].shape[0]
    Fd = p["w1"].shape[1]
    W = max(H, Fd)

    def row(v):
        v = v.reshape(1, -1).astype(jnp.float32)
        return jnp.pad(v, ((0, 0), (0, W - v.shape[1])))

    vec = jnp.concatenate([row(p["b1"]), row(p["b2"]), row(p["g1"]),
                           row(p["be1"]), row(p["g2"]), row(p["be2"]),
                           row(p["bp"]), row(p["bc"]), row(p["cw"])], axis=0)

    bf = lambda a: a.astype(jnp.bfloat16)
    return {
        "emb": p["emb"].astype(jnp.float32),   # gathered in XLA, stays f32
        "wqkv": bf(jnp.concatenate([p["wq"], p["wk"], p["wv"]], axis=1)),
        "wo": bf(p["wo"]), "w1": bf(p["w1"]), "w2": bf(p["w2"]),
        "wp": bf(p["wp"]), "wc": bf(p["wc"]),
        "vec": vec,
    }


# ----------------------------- pure-JAX reference ------------------------------

def forward_ref(p, input_ids, attention_mask, labels):
    x = p["emb"][input_ids]
    B, S, H = x.shape
    mask = attention_mask.astype(jnp.float32)
    q = x @ p["wq"]; k = x @ p["wk"]; v = x @ p["wv"]
    scores = jnp.einsum("bqd,bkd->bqk", q, k) / jnp.sqrt(jnp.float32(H))
    scores = scores + (mask[:, None, :] - 1.0) * 1e9
    attn = jax.nn.softmax(scores, axis=-1)
    ctx = jnp.einsum("bqk,bkd->bqd", attn, v) @ p["wo"]
    h = _layer_norm(x + ctx, p["g1"], p["be1"])
    ff = _gelu_tanh(h @ p["w1"] + p["b1"]) @ p["w2"] + p["b2"]
    h2 = _layer_norm(h + ff, p["g2"], p["be2"])
    pooled = jnp.tanh(h2[:, 0, :] @ p["wp"] + p["bp"])
    logits = pooled @ p["wc"] + p["bc"]
    probs = jax.nn.softmax(logits, axis=-1)
    lsm = jax.nn.log_softmax(probs, axis=-1)
    onehot = jax.nn.one_hot(labels, probs.shape[1], dtype=jnp.float32)
    nll = -jnp.sum(onehot * lsm, axis=1)
    w = jnp.sum(onehot * p["cw"], axis=1)
    loss = jnp.sum(w * nll) / jnp.sum(w)
    return {"loss": loss, "logits": probs}


# ----------------------------- main ---------------------------------------------

if __name__ == "__main__":
    B, S, H, F, L, V = 2, 8, 32, 64, 4, 50   # batch, seq, hidden, ffn, labels, vocab

    key = jax.random.PRNGKey(0)
    ks = jax.random.split(key, 16)

    def nrm(k, shape, scale=0.05):
        return (scale * jax.random.normal(k, shape)).astype(jnp.float32)

    raw = {
        "emb": nrm(ks[0], (V, H), 0.1),
        "wq": nrm(ks[1], (H, H)), "wk": nrm(ks[2], (H, H)),
        "wv": nrm(ks[3], (H, H)), "wo": nrm(ks[4], (H, H)),
        "w1": nrm(ks[5], (H, F)), "b1": nrm(ks[6], (1, F)),
        "w2": nrm(ks[7], (F, H)), "b2": nrm(ks[8], (1, H)),
        "g1": jnp.ones((1, H), jnp.float32), "be1": jnp.zeros((1, H), jnp.float32),
        "g2": jnp.ones((1, H), jnp.float32), "be2": jnp.zeros((1, H), jnp.float32),
        "wp": nrm(ks[9], (H, H)), "bp": nrm(ks[10], (1, H)),
        "wc": nrm(ks[11], (H, L)), "bc": nrm(ks[12], (1, L)),
        "cw": (1.0 + jax.random.uniform(ks[13], (1, L))).astype(jnp.float32),
    }
    packed = pack_params(raw)

    input_ids = jax.random.randint(ks[14], (B, S), 0, V, dtype=jnp.int32)
    attention_mask = jnp.ones((B, S), jnp.float32).at[1, 6:].set(0.0)
    labels = jax.random.randint(ks[15], (B,), 0, L, dtype=jnp.int32)

    out = jax.jit(forward)(packed, input_ids, attention_mask, labels)
    jax.block_until_ready(out)

    ref = forward_ref(raw, input_ids, attention_mask, labels)
    # bf16 matmul operands inside the kernel (f32 accumulation / f32 elementwise)
    # bound the deviation from the pure-f32 reference to ~1e-3.
    assert jnp.allclose(out["logits"], ref["logits"], atol=5e-3), "probs mismatch"
    assert jnp.allclose(out["loss"], ref["loss"], atol=5e-3), "loss mismatch"

    print("KERNEL_OK")
</pallas_src>

<mosaic_0001>
module attributes {stable_mosaic.version = 11 : i64} {
  func.func @fused_forward_kernel(%arg0: i32, %arg1: memref<2xi32, #tpu.memory_space<smem>>, %arg2: memref<1x8x32xf32, #tpu.memory_space<vmem>>, %arg3: memref<1x1x8xf32, #tpu.memory_space<vmem>>, %arg4: memref<32x96xbf16, #tpu.memory_space<vmem>>, %arg5: memref<32x32xbf16, #tpu.memory_space<vmem>>, %arg6: memref<32x64xbf16, #tpu.memory_space<vmem>>, %arg7: memref<64x32xbf16, #tpu.memory_space<vmem>>, %arg8: memref<32x32xbf16, #tpu.memory_space<vmem>>, %arg9: memref<32x4xbf16, #tpu.memory_space<vmem>>, %arg10: memref<9x64xf32, #tpu.memory_space<vmem>>, %arg11: memref<1x1x4xf32, #tpu.memory_space<vmem>>, %arg12: memref<1x1x1xf32, #tpu.memory_space<vmem>>, %arg13: memref<1x1x1xf32, #tpu.memory_space<vmem>>) attributes {dimension_semantics = [#tpu.dimension_semantics<parallel>], iteration_bounds = array<i64: 2>, scalar_prefetch = 0 : i64, scratch_operands = 0 : i64, tpu.core_type = #tpu.core_type<tc>, window_params = [{transform_indices = @transform_0, window_bounds = array<i64: 2>}, {transform_indices = @transform_1, window_bounds = array<i64: 1, 8, 32>}, {transform_indices = @transform_2, window_bounds = array<i64: 1, 1, 8>}, {pipeline_mode = #tpu.pipeline_mode<synchronous>, transform_indices = @transform_3, window_bounds = array<i64: 32, 96>}, {pipeline_mode = #tpu.pipeline_mode<synchronous>, transform_indices = @transform_4, window_bounds = array<i64: 32, 32>}, {pipeline_mode = #tpu.pipeline_mode<synchronous>, transform_indices = @transform_5, window_bounds = array<i64: 32, 64>}, {pipeline_mode = #tpu.pipeline_mode<synchronous>, transform_indices = @transform_6, window_bounds = array<i64: 64, 32>}, {pipeline_mode = #tpu.pipeline_mode<synchronous>, transform_indices = @transform_7, window_bounds = array<i64: 32, 32>}, {pipeline_mode = #tpu.pipeline_mode<synchronous>, transform_indices = @transform_8, window_bounds = array<i64: 32, 4>}, {pipeline_mode = #tpu.pipeline_mode<synchronous>, transform_indices = @transform_9, window_bounds = array<i64: 9, 64>}, {transform_indices = @transform_10, window_bounds = array<i64: 1, 1, 4>}, {transform_indices = @transform_11, window_bounds = array<i64: 1, 1, 1>}, {transform_indices = @transform_12, window_bounds = array<i64: 1, 1, 1>}]} {
    %c0 = arith.constant 0 : index
    %c0_0 = arith.constant 0 : index
    %0 = vector.load %arg10[%c0, %c0_0] : memref<9x64xf32, #tpu.memory_space<vmem>>, vector<1x64xf32>
    %c1 = arith.constant 1 : index
    %c0_1 = arith.constant 0 : index
    %1 = vector.load %arg10[%c1, %c0_1] : memref<9x64xf32, #tpu.memory_space<vmem>>, vector<1x32xf32>
    %c2 = arith.constant 2 : index
    %c0_2 = arith.constant 0 : index
    %2 = vector.load %arg10[%c2, %c0_2] : memref<9x64xf32, #tpu.memory_space<vmem>>, vector<1x32xf32>
    %c3 = arith.constant 3 : index
    %c0_3 = arith.constant 0 : index
    %3 = vector.load %arg10[%c3, %c0_3] : memref<9x64xf32, #tpu.memory_space<vmem>>, vector<1x32xf32>
    %c4 = arith.constant 4 : index
    %c0_4 = arith.constant 0 : index
    %4 = vector.load %arg10[%c4, %c0_4] : memref<9x64xf32, #tpu.memory_space<vmem>>, vector<1x32xf32>
    %c5 = arith.constant 5 : index
    %c0_5 = arith.constant 0 : index
    %5 = vector.load %arg10[%c5, %c0_5] : memref<9x64xf32, #tpu.memory_space<vmem>>, vector<1x32xf32>
    %c6 = arith.constant 6 : index
    %c0_6 = arith.constant 0 : index
    %6 = vector.load %arg10[%c6, %c0_6] : memref<9x64xf32, #tpu.memory_space<vmem>>, vector<1x32xf32>
    %c7 = arith.constant 7 : index
    %c0_7 = arith.constant 0 : index
    %7 = vector.load %arg10[%c7, %c0_7] : memref<9x64xf32, #tpu.memory_space<vmem>>, vector<1x4xf32>
    %c8 = arith.constant 8 : index
    %c0_8 = arith.constant 0 : index
    %8 = vector.load %arg10[%c8, %c0_8] : memref<9x64xf32, #tpu.memory_space<vmem>>, vector<1x4xf32>
    %c0_9 = arith.constant 0 : index
    %c0_10 = arith.constant 0 : index
    %c0_11 = arith.constant 0 : index
    %9 = vector.load %arg2[%c0_9, %c0_10, %c0_11] : memref<1x8x32xf32, #tpu.memory_space<vmem>>, vector<1x8x32xf32>
    %10 = vector.shape_cast %9 : vector<1x8x32xf32> to vector<8x32xf32>
    %c0_12 = arith.constant 0 : index
    %c0_13 = arith.constant 0 : index
    %11 = vector.load %arg4[%c0_12, %c0_13] : memref<32x96xbf16, #tpu.memory_space<vmem>>, vector<32x96xbf16>
    %12 = arith.truncf %10 : vector<8x32xf32> to vector<8x32xbf16>
    %cst = arith.constant dense<0.000000e+00> : vector<8x96xf32>
    %13 = tpu.matmul %12, %11, %cst {dimension_numbers = #tpu.dot_dimension_numbers<[1], [0], [0], [1], [0, 0, 1, 1], [], []>} : vector<8x32xbf16>, vector<32x96xbf16>, vector<8x96xf32> -> vector<8x96xf32>
    %14 = vector.extract_strided_slice %13 {offsets = [0, 0], sizes = [8, 32], strides = [1, 1]} : vector<8x96xf32> to vector<8x32xf32>
    %15 = vector.extract_strided_slice %13 {offsets = [0, 32], sizes = [8, 32], strides = [1, 1]} : vector<8x96xf32> to vector<8x32xf32>
    %16 = vector.extract_strided_slice %13 {offsets = [0, 64], sizes = [8, 32], strides = [1, 1]} : vector<8x96xf32> to vector<8x32xf32>
    %17 = arith.truncf %14 : vector<8x32xf32> to vector<8x32xbf16>
    %18 = arith.truncf %15 : vector<8x32xf32> to vector<8x32xbf16>
    %cst_14 = arith.constant dense<0.000000e+00> : vector<8x8xf32>
    %19 = tpu.matmul %17, %18, %cst_14 {dimension_numbers = #tpu.dot_dimension_numbers<[1], [1], [0], [0], [0, 0, 1, 0], [], []>} : vector<8x32xbf16>, vector<8x32xbf16>, vector<8x8xf32> -> vector<8x8xf32>
    %cst_15 = arith.constant 0.176776692 : f32
    %20 = vector.broadcast %cst_15 : f32 to vector<8x8xf32>
    %21 = arith.mulf %19, %20 : vector<8x8xf32>
    %c0_16 = arith.constant 0 : index
    %c0_17 = arith.constant 0 : index
    %c0_18 = arith.constant 0 : index
    %22 = vector.load %arg3[%c0_16, %c0_17, %c0_18] : memref<1x1x8xf32, #tpu.memory_space<vmem>>, vector<1x1x8xf32>
    %23 = vector.shape_cast %22 : vector<1x1x8xf32> to vector<1x8xf32>
    %cst_19 = arith.constant 1.000000e+00 : f32
    %24 = vector.broadcast %cst_19 : f32 to vector<1x8xf32>
    %25 = arith.subf %23, %24 : vector<1x8xf32>
    %cst_20 = arith.constant 1.000000e+09 : f32
    %26 = vector.broadcast %cst_20 : f32 to vector<1x8xf32>
    %27 = arith.mulf %25, %26 : vector<1x8xf32>
    %28 = vector.broadcast %27 : vector<1x8xf32> to vector<8x8xf32>
    %29 = arith.addf %21, %28 : vector<8x8xf32>
    %cst_21 = arith.constant dense<0xFF800000> : vector<8xf32>
    %30 = vector.multi_reduction <maximumf>, %29, %cst_21 [1] : vector<8x8xf32> to vector<8xf32>
    %31 = vector.shape_cast %30 : vector<8xf32> to vector<8x1xf32>
    %32 = vector.broadcast %31 : vector<8x1xf32> to vector<8x8xf32>
    %33 = arith.subf %29, %32 : vector<8x8xf32>
    %34 = math.exp %33 : vector<8x8xf32>
    %cst_22 = arith.constant dense<0.000000e+00> : vector<8xf32>
    %35 = vector.multi_reduction <add>, %34, %cst_22 [1] : vector<8x8xf32> to vector<8xf32>
    %36 = vector.shape_cast %35 : vector<8xf32> to vector<8x1xf32>
    %37 = tpu.reciprocal %36 {approx = true} : vector<8x1xf32> -> vector<8x1xf32>
    %38 = vector.broadcast %37 : vector<8x1xf32> to vector<8x8xf32>
    %39 = arith.mulf %34, %38 : vector<8x8xf32>
    %40 = arith.truncf %39 : vector<8x8xf32> to vector<8x8xbf16>
    %41 = arith.truncf %16 : vector<8x32xf32> to vector<8x32xbf16>
    %cst_23 = arith.constant dense<0.000000e+00> : vector<8x32xf32>
    %42 = tpu.matmul %40, %41, %cst_23 {dimension_numbers = #tpu.dot_dimension_numbers<[1], [0], [0], [1], [0, 0, 1, 1], [], []>} : vector<8x8xbf16>, vector<8x32xbf16>, vector<8x32xf32> -> vector<8x32xf32>
    %c0_24 = arith.constant 0 : index
    %c0_25 = arith.constant 0 : index
    %43 = vector.load %arg5[%c0_24, %c0_25] : memref<32x32xbf16, #tpu.memory_space<vmem>>, vector<32x32xbf16>
    %44 = arith.truncf %42 : vector<8x32xf32> to vector<8x32xbf16>
    %cst_26 = arith.constant dense<0.000000e+00> : vector<8x32xf32>
    %45 = tpu.matmul %44, %43, %cst_26 {dimension_numbers = #tpu.dot_dimension_numbers<[1], [0], [0], [1], [0, 0, 1, 1], [], []>} : vector<8x32xbf16>, vector<32x32xbf16>, vector<8x32xf32> -> vector<8x32xf32>
    %46 = arith.addf %10, %45 : vector<8x32xf32>
    %cst_27 = arith.constant dense<0.000000e+00> : vector<8xf32>
    %47 = vector.multi_reduction <add>, %46, %cst_27 [1] : vector<8x32xf32> to vector<8xf32>
    %48 = vector.shape_cast %47 : vector<8xf32> to vector<8x1xf32>
    %cst_28 = arith.constant 3.200000e+01 : f32
    %49 = vector.broadcast %cst_28 : f32 to vector<8x1xf32>
    %50 = arith.divf %48, %49 : vector<8x1xf32>
    %51 = vector.broadcast %50 : vector<8x1xf32> to vector<8x32xf32>
    %52 = arith.subf %46, %51 : vector<8x32xf32>
    %53 = arith.mulf %52, %52 : vector<8x32xf32>
    %cst_29 = arith.constant dense<0.000000e+00> : vector<8xf32>
    %54 = vector.multi_reduction <add>, %53, %cst_29 [1] : vector<8x32xf32> to vector<8xf32>
    %55 = vector.shape_cast %54 : vector<8xf32> to vector<8x1xf32>
    %cst_30 = arith.constant 3.200000e+01 : f32
    %56 = vector.broadcast %cst_30 : f32 to vector<8x1xf32>
    %57 = arith.divf %55, %56 : vector<8x1xf32>
    %58 = vector.broadcast %50 : vector<8x1xf32> to vector<8x32xf32>
    %59 = arith.subf %46, %58 : vector<8x32xf32>
    %cst_31 = arith.constant 9.99999974E-6 : f32
    %60 = vector.broadcast %cst_31 : f32 to vector<8x1xf32>
    %61 = arith.addf %57, %60 : vector<8x1xf32>
    %62 = math.rsqrt %61 : vector<8x1xf32>
    %63 = vector.broadcast %62 : vector<8x1xf32> to vector<8x32xf32>
    %64 = arith.mulf %59, %63 : vector<8x32xf32>
    %65 = vector.broadcast %2 : vector<1x32xf32> to vector<8x32xf32>
    %66 = arith.mulf %64, %65 : vector<8x32xf32>
    %67 = vector.broadcast %3 : vector<1x32xf32> to vector<8x32xf32>
    %68 = arith.addf %66, %67 : vector<8x32xf32>
    %c0_32 = arith.constant 0 : index
    %c0_33 = arith.constant 0 : index
    %69 = vector.load %arg6[%c0_32, %c0_33] : memref<32x64xbf16, #tpu.memory_space<vmem>>, vector<32x64xbf16>
    %70 = arith.truncf %68 : vector<8x32xf32> to vector<8x32xbf16>
    %cst_34 = arith.constant dense<0.000000e+00> : vector<8x64xf32>
    %71 = tpu.matmul %70, %69, %cst_34 {dimension_numbers = #tpu.dot_dimension_numbers<[1], [0], [0], [1], [0, 0, 1, 1], [], []>} : vector<8x32xbf16>, vector<32x64xbf16>, vector<8x64xf32> -> vector<8x64xf32>
    %72 = vector.broadcast %0 : vector<1x64xf32> to vector<8x64xf32>
    %73 = arith.addf %71, %72 : vector<8x64xf32>
    %cst_35 = arith.constant 5.000000e-01 : f32
    %74 = vector.broadcast %cst_35 : f32 to vector<8x64xf32>
    %75 = arith.mulf %74, %73 : vector<8x64xf32>
    %cst_36 = arith.constant 4.471500e-02 : f32
    %76 = vector.broadcast %cst_36 : f32 to vector<8x64xf32>
    %77 = arith.mulf %76, %73 : vector<8x64xf32>
    %78 = arith.mulf %77, %73 : vector<8x64xf32>
    %79 = arith.mulf %78, %73 : vector<8x64xf32>
    %80 = arith.addf %73, %79 : vector<8x64xf32>
    %cst_37 = arith.constant 0.797884583 : f32
    %81 = vector.broadcast %cst_37 : f32 to vector<8x64xf32>
    %82 = arith.mulf %81, %80 : vector<8x64xf32>
    %83 = math.tanh %82 : vector<8x64xf32>
    %cst_38 = arith.constant 1.000000e+00 : f32
    %84 = vector.broadcast %cst_38 : f32 to vector<8x64xf32>
    %85 = arith.addf %84, %83 : vector<8x64xf32>
    %86 = arith.mulf %75, %85 : vector<8x64xf32>
    %c0_39 = arith.constant 0 : index
    %c0_40 = arith.constant 0 : index
    %87 = vector.load %arg7[%c0_39, %c0_40] : memref<64x32xbf16, #tpu.memory_space<vmem>>, vector<64x32xbf16>
    %88 = arith.truncf %86 : vector<8x64xf32> to vector<8x64xbf16>
    %cst_41 = arith.constant dense<0.000000e+00> : vector<8x32xf32>
    %89 = tpu.matmul %88, %87, %cst_41 {dimension_numbers = #tpu.dot_dimension_numbers<[1], [0], [0], [1], [0, 0, 1, 1], [], []>} : vector<8x64xbf16>, vector<64x32xbf16>, vector<8x32xf32> -> vector<8x32xf32>
    %90 = vector.broadcast %1 : vector<1x32xf32> to vector<8x32xf32>
    %91 = arith.addf %89, %90 : vector<8x32xf32>
    %92 = arith.addf %68, %91 : vector<8x32xf32>
    %cst_42 = arith.constant dense<0.000000e+00> : vector<8xf32>
    %93 = vector.multi_reduction <add>, %92, %cst_42 [1] : vector<8x32xf32> to vector<8xf32>
    %94 = vector.shape_cast %93 : vector<8xf32> to vector<8x1xf32>
    %cst_43 = arith.constant 3.200000e+01 : f32
    %95 = vector.broadcast %cst_43 : f32 to vector<8x1xf32>
    %96 = arith.divf %94, %95 : vector<8x1xf32>
    %97 = vector.broadcast %96 : vector<8x1xf32> to vector<8x32xf32>
    %98 = arith.subf %92, %97 : vector<8x32xf32>
    %99 = arith.mulf %98, %98 : vector<8x32xf32>
    %cst_44 = arith.constant dense<0.000000e+00> : vector<8xf32>
    %100 = vector.multi_reduction <add>, %99, %cst_44 [1] : vector<8x32xf32> to vector<8xf32>
    %101 = vector.shape_cast %100 : vector<8xf32> to vector<8x1xf32>
    %cst_45 = arith.constant 3.200000e+01 : f32
    %102 = vector.broadcast %cst_45 : f32 to vector<8x1xf32>
    %103 = arith.divf %101, %102 : vector<8x1xf32>
    %104 = vector.broadcast %96 : vector<8x1xf32> to vector<8x32xf32>
    %105 = arith.subf %92, %104 : vector<8x32xf32>
    %cst_46 = arith.constant 9.99999974E-6 : f32
    %106 = vector.broadcast %cst_46 : f32 to vector<8x1xf32>
    %107 = arith.addf %103, %106 : vector<8x1xf32>
    %108 = math.rsqrt %107 : vector<8x1xf32>
    %109 = vector.broadcast %108 : vector<8x1xf32> to vector<8x32xf32>
    %110 = arith.mulf %105, %109 : vector<8x32xf32>
    %111 = vector.broadcast %4 : vector<1x32xf32> to vector<8x32xf32>
    %112 = arith.mulf %110, %111 : vector<8x32xf32>
    %113 = vector.broadcast %5 : vector<1x32xf32> to vector<8x32xf32>
    %114 = arith.addf %112, %113 : vector<8x32xf32>
    %115 = vector.extract_strided_slice %114 {offsets = [0, 0], sizes = [1, 32], strides = [1, 1]} : vector<8x32xf32> to vector<1x32xf32>
    %c0_47 = arith.constant 0 : index
    %c0_48 = arith.constant 0 : index
    %116 = vector.load %arg8[%c0_47, %c0_48] : memref<32x32xbf16, #tpu.memory_space<vmem>>, vector<32x32xbf16>
    %117 = arith.truncf %115 : vector<1x32xf32> to vector<1x32xbf16>
    %cst_49 = arith.constant dense<0.000000e+00> : vector<1x32xf32>
    %118 = tpu.matmul %117, %116, %cst_49 {dimension_numbers = #tpu.dot_dimension_numbers<[1], [0], [0], [1], [0, 0, 1, 1], [], []>} : vector<1x32xbf16>, vector<32x32xbf16>, vector<1x32xf32> -> vector<1x32xf32>
    %119 = arith.addf %118, %6 : vector<1x32xf32>
    %120 = math.tanh %119 : vector<1x32xf32>
    %c0_50 = arith.constant 0 : index
    %c0_51 = arith.constant 0 : index
    %121 = vector.load %arg9[%c0_50, %c0_51] : memref<32x4xbf16, #tpu.memory_space<vmem>>, vector<32x4xbf16>
    %122 = arith.truncf %120 : vector<1x32xf32> to vector<1x32xbf16>
    %cst_52 = arith.constant dense<0.000000e+00> : vector<1x4xf32>
    %123 = tpu.matmul %122, %121, %cst_52 {dimension_numbers = #tpu.dot_dimension_numbers<[1], [0], [0], [1], [0, 0, 1, 1], [], []>} : vector<1x32xbf16>, vector<32x4xbf16>, vector<1x4xf32> -> vector<1x4xf32>
    %124 = arith.addf %123, %7 : vector<1x4xf32>
    %cst_53 = arith.constant dense<0xFF800000> : vector<1xf32>
    %125 = vector.multi_reduction <maximumf>, %124, %cst_53 [1] : vector<1x4xf32> to vector<1xf32>
    %126 = vector.shape_cast %125 : vector<1xf32> to vector<1x1xf32>
    %127 = vector.broadcast %126 : vector<1x1xf32> to vector<1x4xf32>
    %128 = arith.subf %124, %127 : vector<1x4xf32>
    %129 = math.exp %128 : vector<1x4xf32>
    %cst_54 = arith.constant dense<0.000000e+00> : vector<1xf32>
    %130 = vector.multi_reduction <add>, %129, %cst_54 [1] : vector<1x4xf32> to vector<1xf32>
    %131 = vector.shape_cast %130 : vector<1xf32> to vector<1x1xf32>
    %132 = vector.broadcast %131 : vector<1x1xf32> to vector<1x4xf32>
    %133 = arith.divf %129, %132 : vector<1x4xf32>
    %c0_55 = arith.constant 0 : index
    %c0_56 = arith.constant 0 : index
    %c0_57 = arith.constant 0 : index
    %134 = vector.load %arg11[%c0_55, %c0_56, %c0_57] : memref<1x1x4xf32, #tpu.memory_space<vmem>>, vector<1x1x4xf32>
    %135 = vector.shape_cast %134 : vector<1x1x4xf32> to vector<1x4xf32>
    %136 = vector.shape_cast %133 : vector<1x4xf32> to vector<1x1x4xf32>
    tpu.vector_store %arg11[%c0_55, %c0_56, %c0_57], %136 {strides = array<i32>} : memref<1x1x4xf32, #tpu.memory_space<vmem>>, vector<1x1x4xf32>,
    %cst_58 = arith.constant dense<0xFF800000> : vector<1xf32>
    %137 = vector.multi_reduction <maximumf>, %133, %cst_58 [1] : vector<1x4xf32> to vector<1xf32>
    %138 = vector.shape_cast %137 : vector<1xf32> to vector<1x1xf32>
    %139 = vector.broadcast %138 : vector<1x1xf32> to vector<1x4xf32>
    %140 = arith.subf %133, %139 : vector<1x4xf32>
    %141 = math.exp %140 : vector<1x4xf32>
    %cst_59 = arith.constant dense<0.000000e+00> : vector<1xf32>
    %142 = vector.multi_reduction <add>, %141, %cst_59 [1] : vector<1x4xf32> to vector<1xf32>
    %143 = vector.shape_cast %142 : vector<1xf32> to vector<1x1xf32>
    %144 = math.log %143 : vector<1x1xf32>
    %145 = arith.addf %138, %144 : vector<1x1xf32>
    %146 = vector.broadcast %145 : vector<1x1xf32> to vector<1x4xf32>
    %147 = arith.subf %133, %146 : vector<1x4xf32>
    %148 = arith.index_cast %arg0 : i32 to index
    %149 = memref.load %arg1[%148] : memref<2xi32, #tpu.memory_space<smem>>
    %150 = tpu.iota {dimensions = array<i32: 1>} : vector<1x4xi32>
    %151 = vector.broadcast %149 : i32 to vector<1x4xi32>
    %152 = arith.cmpi eq, %150, %151 : vector<1x4xi32>
    %153 = arith.extui %152 : vector<1x4xi1> to vector<1x4xi32>
    %154 = arith.sitofp %153 : vector<1x4xi32> to vector<1x4xf32>
    %155 = arith.mulf %154, %147 : vector<1x4xf32>
    %cst_60 = arith.constant dense<0.000000e+00> : vector<1xf32>
    %156 = vector.multi_reduction <add>, %155, %cst_60 [1] : vector<1x4xf32> to vector<1xf32>
    %157 = vector.shape_cast %156 : vector<1xf32> to vector<1x1xf32>
    %cst_61 = arith.constant 0.000000e+00 : f32
    %158 = vector.broadcast %cst_61 : f32 to vector<1x1xf32>
    %159 = arith.subf %158, %157 : vector<1x1xf32>
    %160 = arith.mulf %154, %8 : vector<1x4xf32>
    %cst_62 = arith.constant dense<0.000000e+00> : vector<1xf32>
    %161 = vector.multi_reduction <add>, %160, %cst_62 [1] : vector<1x4xf32> to vector<1xf32>
    %162 = vector.shape_cast %161 : vector<1xf32> to vector<1x1xf32>
    %163 = arith.mulf %162, %159 : vector<1x1xf32>
    %c0_63 = arith.constant 0 : index
    %c0_64 = arith.constant 0 : index
    %c0_65 = arith.constant 0 : index
    %164 = vector.load %arg12[%c0_63, %c0_64, %c0_65] : memref<1x1x1xf32, #tpu.memory_space<vmem>>, vector<1x1x1xf32>
    %165 = vector.shape_cast %164 : vector<1x1x1xf32> to vector<1x1xf32>
    %166 = vector.shape_cast %163 : vector<1x1xf32> to vector<1x1x1xf32>
    tpu.vector_store %arg12[%c0_63, %c0_64, %c0_65], %166 {strides = array<i32>} : memref<1x1x1xf32, #tpu.memory_space<vmem>>, vector<1x1x1xf32>,
    %c0_66 = arith.constant 0 : index
    %c0_67 = arith.constant 0 : index
    %c0_68 = arith.constant 0 : index
    %167 = vector.load %arg13[%c0_66, %c0_67, %c0_68] : memref<1x1x1xf32, #tpu.memory_space<vmem>>, vector<1x1x1xf32>
    %168 = vector.shape_cast %167 : vector<1x1x1xf32> to vector<1x1xf32>
    %169 = vector.shape_cast %162 : vector<1x1xf32> to vector<1x1x1xf32>
    tpu.vector_store %arg13[%c0_66, %c0_67, %c0_68], %169 {strides = array<i32>} : memref<1x1x1xf32, #tpu.memory_space<vmem>>, vector<1x1x1xf32>,
    return
  }
  func.func @transform_0(%arg0: i32) -> i32 {
    %c0_i32 = arith.constant 0 : i32
    %c0_i32_0 = arith.constant 0 : i32
    return %c0_i32 : i32
  }
  func.func @transform_1(%arg0: i32) -> (i32, i32, i32) {
    %c0_i32 = arith.constant 0 : i32
    %c0_i32_0 = arith.constant 0 : i32
    %c0_i32_1 = arith.constant 0 : i32
    return %arg0, %c0_i32, %c0_i32_0 : i32, i32, i32
  }
  func.func @transform_2(%arg0: i32) -> (i32, i32, i32) {
    %c0_i32 = arith.constant 0 : i32
    %c0_i32_0 = arith.constant 0 : i32
    %c0_i32_1 = arith.constant 0 : i32
    return %arg0, %c0_i32, %c0_i32_0 : i32, i32, i32
  }
  func.func @transform_3(%arg0: i32) -> (i32, i32) {
    %c0_i32 = arith.constant 0 : i32
    %c0_i32_0 = arith.constant 0 : i32
    %c0_i32_1 = arith.constant 0 : i32
    return %c0_i32, %c0_i32_0 : i32, i32
  }
  func.func @transform_4(%arg0: i32) -> (i32, i32) {
    %c0_i32 = arith.constant 0 : i32
    %c0_i32_0 = arith.constant 0 : i32
    %c0_i32_1 = arith.constant 0 : i32
    return %c0_i32, %c0_i32_0 : i32, i32
  }
  func.func @transform_5(%arg0: i32) -> (i32, i32) {
    %c0_i32 = arith.constant 0 : i32
    %c0_i32_0 = arith.constant 0 : i32
    %c0_i32_1 = arith.constant 0 : i32
    return %c0_i32, %c0_i32_0 : i32, i32
  }
  func.func @transform_6(%arg0: i32) -> (i32, i32) {
    %c0_i32 = arith.constant 0 : i32
    %c0_i32_0 = arith.constant 0 : i32
    %c0_i32_1 = arith.constant 0 : i32
    return %c0_i32, %c0_i32_0 : i32, i32
  }
  func.func @transform_7(%arg0: i32) -> (i32, i32) {
    %c0_i32 = arith.constant 0 : i32
    %c0_i32_0 = arith.constant 0 : i32
    %c0_i32_1 = arith.constant 0 : i32
    return %c0_i32, %c0_i32_0 : i32, i32
  }
  func.func @transform_8(%arg0: i32) -> (i32, i32) {
    %c0_i32 = arith.constant 0 : i32
    %c0_i32_0 = arith.constant 0 : i32
    %c0_i32_1 = arith.constant 0 : i32
    return %c0_i32, %c0_i32_0 : i32, i32
  }
  func.func @transform_9(%arg0: i32) -> (i32, i32) {
    %c0_i32 = arith.constant 0 : i32
    %c0_i32_0 = arith.constant 0 : i32
    %c0_i32_1 = arith.constant 0 : i32
    return %c0_i32, %c0_i32_0 : i32, i32
  }
  func.func @transform_10(%arg0: i32) -> (i32, i32, i32) {
    %c0_i32 = arith.constant 0 : i32
    %c0_i32_0 = arith.constant 0 : i32
    %c0_i32_1 = arith.constant 0 : i32
    return %arg0, %c0_i32, %c0_i32_0 : i32, i32, i32
  }
  func.func @transform_11(%arg0: i32) -> (i32, i32, i32) {
    %c0_i32 = arith.constant 0 : i32
    %c0_i32_0 = arith.constant 0 : i32
    %c0_i32_1 = arith.constant 0 : i32
    return %arg0, %c0_i32, %c0_i32_0 : i32, i32, i32
  }
  func.func @transform_12(%arg0: i32) -> (i32, i32, i32) {
    %c0_i32 = arith.constant 0 : i32
    %c0_i32_0 = arith.constant 0 : i32
    %c0_i32_1 = arith.constant 0 : i32
    return %arg0, %c0_i32, %c0_i32_0 : i32, i32, i32
  }
}

</mosaic_0001>

<bundles_post_ra>
// kernel: forward.1
= control target key start
LH: loop header
LB: loop body
LE: loop exit
PB: predicated region body
PF: predicated region fallthrough
CT: control target
= control target key end

     0   :  { %s1855_s0 = inlined_call_operand.vmem [shape: s32[2], index: 0, kind: input, shape index: {}]   ;;  %s1856_s1 = inlined_call_operand.vmem [shape: f32[2,8,32], index: 1, kind: input, shape index: {}]   ;;  %s1857_s2 = inlined_call_operand.vmem [shape: f32[2,1,8], index: 2, kind: input, shape index: {}]   ;;  %s1858_s3 = inlined_call_operand.vmem [shape: bf16[32,96], index: 3, kind: input, shape index: {}]   ;;  %s1859_s4 = inlined_call_operand.vmem [shape: bf16[32,32], index: 4, kind: input, shape index: {}]   ;;  %s1860_s5 = inlined_call_operand.vmem [shape: bf16[32,64], index: 5, kind: input, shape index: {}]   ;;  %s1861_s6 = inlined_call_operand.vmem [shape: bf16[64,32], index: 6, kind: input, shape index: {}]   ;;  %s1862_s7 = inlined_call_operand.vmem [shape: bf16[32,32], index: 7, kind: input, shape index: {}]   ;;  %s1863_s8 = inlined_call_operand.vmem [shape: bf16[32,4], index: 8, kind: input, shape index: {}]   ;;  %s1864_s9 = inlined_call_operand.vmem [shape: f32[9,64], index: 9, kind: input, shape index: {}]   ;;  %s1865_s10 = inlined_call_operand.hbm [shape: f32[2,1,4], index: 10, kind: output, shape index: {0}]   ;;  %s1866_s11 = inlined_call_operand.vmem [shape: f32[2,1,1], index: 11, kind: output, shape index: {1}]   ;;  %s1867_s12 = inlined_call_operand.vmem [shape: f32[2,1,1], index: 12, kind: output, shape index: {2}]  }
   0x1   :  { %1869 = sst [smem:[#allocation8_spill]] %s1855_s0 }
   0x2   :  { %1870 = sst [smem:[#allocation9_spill]] %s1856_s1 }
   0x3   :  { %1871 = sst [smem:[#allocation10_spill]] %s1857_s2 }
   0x4   :  { %1872 = sst [smem:[#allocation11_spill]] %s1858_s3 }
   0x5   :  { %1873 = sst [smem:[#allocation12_spill]] %s1859_s4 }
   0x6   :  { %18 = vsyncpa [#allocation4], 0 }
   0x7   :  { %19 = vsyncpa [#allocation3], 0 }
   0x8   :  { %21 = vsyncpa [#allocation3 + $0x1], 0  ;;  %s1587_s21 = smov 0   ;;  %s1589_s22 = smov 0  }
   0x9   :  { %s1591_s23 = smov 0   ;;  %s1593_s24 = smov 0  }
   0xa LB: > { %s1608_s25 = sadd.s32 4294967295, %s1514_s24   ;;  %s1217_s26 = sadd.s32 4294967294, %s1514_s24   ;;  %s1514_s24 = sphi %s1593_s24, %s1886_s24   ;;  %s1510_s23 = sphi %s1591_s23, %s1885_s23   ;;  %s1506_s22 = sphi %s1589_s22, %s1884_s22   ;;  %s1502_s21 = sphi %s1587_s21, %s1883_s21  }
   0xb   : > { %s1612_s27 = sadd.s32 1, %s1514_s24   ;;  %s254_s28 = sadd.s32 1, %s1510_s23 }
   0xc   : > { %s251_s29 = ssub.s32 %s1514_s24, %s1612_s27  ;;  %p264_p0 = scmp.ne.s32.totalorder %s1510_s23, %s1506_s22 }
   0xd   : > { %p252_p1 = scmp.eq.s32.totalorder %s251_s29, 0  ;;  %p265_p2 = scmp.eq.s32.totalorder %s1608_s25, 1 }
   0xe   : > { %p270_p3 = scmp.ne.s32.totalorder %s1506_s22, %s1502_s21  ;;  %p271_p4 = scmp.eq.s32.totalorder %s1217_s26, 1 }
   0xf   : > { %s1623_s30 = scalar_select %p252_p1, %s1510_s23, %s254_s28  }
  0x10   : > { %p1625_p5 = por %p265_p2, %p264_p0  ;;  %p1629_p6 = por %p271_p4, %p270_p3 }
  0x11   : > { %p1218_p7 = scmp.ge.s32.totalorder %s1514_s24, 1  ;;  %p330_p8 = scmp.lt.s32.totalorder %s1514_s24, 3 }
  0x12   : > { %p1359_p9 = scmp.eq.s32.totalorder %s1608_s25, 0  ;;  %s1877_s0 = sld [smem:[#allocation8_spill]] }
  0x13   : > { %p1636_p10 = pnand %p1218_p7, %p330_p8 }
  0x15   : > { %p1351_p11 = pneg %p1636_p10 }
  0x17   : > { %p1352_p12 = pnand %p1359_p9, %p1351_p11 }
  0x18   : > { %s343_s18 = sshll.u32 %s1877_s0, 4  ;;  %s344_s18 = int_to_ptr.vmem [resolvable:$true] %s343_s18 }
  0x19   : > { %s1433_s19 = scalar_lea.vmem %s344_s18, 16  ;;  %p1435_p0 = pneg %p1352_p12 }
  0x1a   : > { %p1434_p13 = scmp.ne.s32.totalorder %s344_s18, %s1433_s19  ;;  %p1441_p3 = scmp.lt.s32.totalorder %s344_s18, %s344_s18 }
  0x1b   : > { %p1442_p4 = scmp.lt.s32.totalorder %s1433_s19, %s1433_s19 }
  0x1c   : > { %p1436_p1 = pnand %p1435_p0, %p1434_p13 }
  0x1d   : > { %p1443_p7 = por %p1442_p4, %p1441_p3 }
  0x1e   : > { %p1437_p2 = pneg %p1436_p1 }
  0x20   : > { %p1444_p8 = pnand %p1443_p7, %p1437_p2 }
  0x22   : > { %1447 = shalt.err (!%p1444_p8)
}
  0x23   : > { %s1516_s20 = smov [#allocation2]   ;;  %390 = sbr.rel (%p1636_p10) target bundleno = 3666 (0xe52), region = 60 }
  0x24   : > { %1354 = dma.vmem_to_smem (!%p1352_p12), %s344_s18, 16, %s1516_s20, [#allocation4]  }
  0x2a   : > { %1493 = dma.done.wait (%p1359_p9), [#allocation4], 16  }
  0x2b   : > { %1495 = vsyncadd (%p1359_p9), [#allocation4], 4294967280 }
  0x2c   : > { %396 = sfence }
  0x2d   : > { %s1878_s3 = sld [smem:[#allocation11_spill]]  ;;  %v1517_v1 = vmov 0.0   ;;  %vm1518_vm0 = vmmov 0   ;;  %p440_p9 = scmp.lt.s32.totalorder %s1608_s25, 1  ;;  %vm481_vm1 = vcmask 261120   ;;  %v580_v12 = vlaneseq  ;;  %v1403_v55 = vld [vmem:[%s1860_s5] sm:$0xff]  }
  0x2e   : > { %1281 = vmatprep.subr.bf16.mxu0 %v1517_v1  ;;  %1289 = vmatprep.subr.bf16.mxu1 %v1517_v1  ;;  %s1879_s1 = sld [smem:[#allocation9_spill]]  ;;  %s1519_s26 = smov 96   ;;  %vm586_vm2 = vcmask 64512   ;;  %vm604_vm3 = vcmask 1043456   ;;  %v1404_v56 = vld [vmem:[%s1860_s5 + $0x8] sm:$0xff]   ;;  %vm843_vm4 = vcmask 523264  }
  0x2f   : > { %1285 = vmatprep.mubr.msk.bf16.mxu0 %vm1518_vm0, %v1517_v1  ;;  %1291 = vmatprep.mubr.msk.bf16.mxu1 %vm1518_vm0, %v1517_v1  ;;  %s1668_s16 = scalar_select %p440_p9, %s1608_s25, 1  ;;  %v581_v15 = vshrl.u32 %v580_v12, 7  ;;  %v1233_v61 = vld [vmem:[%s1864_s9 + $0x2] ss:$0 sm:$0xff]  ;;  %v1234_v63 = vld [vmem:[%s1864_s9 + $0x3] ss:$0 sm:$0xff] }
  0x30   : > { %s1880_s2 = sld [smem:[#allocation10_spill]]  ;;  %s1881_s4 = sld [smem:[#allocation12_spill]]  ;;  %vm1032_vm5 = vcmask 24576   ;;  %vm1075_vm7 = vcmask 0  }
  0x31   : > { %s1223_s17 = sshll.u32 %s1668_s16, 3  ;;  %v582_v17 = vsub.s32 0, %v581_v15  ;;  %s1868_s18 = sand.u32 1, %s1506_s22  }
  0x32   : > { %s1789_s19 = scalar_lea.vmem [#allocation5], %s1868_s18  ;;  %s1521_s29 = smov [#allocation5]  }
  0x33   : > { %v1399_v0 = vld [vmem:[%s1878_s3] sm:$0xff]   ;;  %v1400_v2 = vld [vmem:[%s1878_s3 + $0x8] sm:$0xff]  }
  0x34   : > { %1282 = vmatpush3.bf16.msra.mxu0 %v1399_v0  ;;  %s443_s20 = scalar_lea.vmem %s1879_s1, %s1223_s17  ;;  %s1520_s17 = smov 64  }
  0x35   : > { %1283 = vmatprep.subr.bf16.mxu0 %v1517_v1  ;;  %v1675_v3 = vld [vmem:[%s443_s20] sm:$0xff]  ;;  %s1058_s20 = sld [smem:[#allocation2 + %s1608_s25]]  ;;  %s1882_s1 = sand.u32 1, %s1506_s22  }
  0x36   : > { %v468_v4 = vpack.c.bf16 %v1675_v3, %v1675_v3  ;;  %s446_s15 = scalar_lea.vmem %s1880_s2, %s1668_s16  ;;  %v1401_v31 = vld [vmem:[%s1881_s4] sm:$0xff]   ;;  %v1402_v32 = vld [vmem:[%s1881_s4 + $0x8] sm:$0xff]   ;;  %s1079_s2 = scalar_lea.sflag [#allocation3], %s1882_s1 }
  0x37   : > { %v576_v13 = vld [vmem:[%s446_s15] sm:$0x1]  ;;  %s1452_s15 = sshll.u32 %s1521_s29, 4  ;;  %s1453_s15 = int_to_ptr.vmem [resolvable:$false] %s1452_s15 }
  0x38   : > { %1284 = vmatpush3.bf16.msra.mxu0 %v1400_v2  ;;  %v1228_v14 = vadd.f32 -1.0, %v576_v13  ;;  %s1454_s4 = scalar_lea.vmem %s1453_s15, 32 }
  0x39   : > { %1295 = vmatprep.subr.bf16.mxu0 %v1517_v1 }
  0x3a   : > { %v578_v16 = vmul.f32 1e+09, %v1228_v14 }
  0x3b   : > { %1286 = vmatmul.mubr.msk.bf16.vlgmr.msra.gmra.mrb[0].mxu0 %vm481_vm1, %v468_v4  ;;  %v1405_v4 = vld [vmem:[%s1861_s6] sm:$0xff]  }
  0x3c   : > { %1297 = vmatprep.mubr.msk.bf16.mxu0 %vm1518_vm0, %v1517_v1  ;;  %v583_v18 = vrot.slane %v578_v16, %v582_v17 }
 0x10e   : > { %v519_v5 = vpop.f32.mrb[0].mxu0 }
 0x10f   : > { %v525_v6 = vpack.c.bf16 %v519_v5, %v519_v5  ;;  %v1287_v7 = vpop.f32.mrb[1].mxu0  ;;  %v1406_v5 = vld [vmem:[%s1861_s6 + $0x8] sm:$0xff]  }
 0x110   : > { %v522_v8 = vpop.f32.mrb[2].mxu0  ;;  %v1408_v7 = vld [vmem:[%s1861_s6 + $0x18] sm:$0xff]  }
 0x111   : > { %527 = vrot.lane.b32.xlu0 %v525_v6, %s1519_s26  ;;  %v1288_v9 = vpop.f32.mrb[3].mxu0  ;;  %v1235_v8 = vld [vmem:[%s1864_s9] ss:$0 sm:$0xff]  ;;  %s1097_s26 = sshll.u32 %s1789_s19, 4  ;;  %s1098_s26 = int_to_ptr.vmem [resolvable:$true] %s1097_s26 }
 0x112   : > { %s1448_s3 = scalar_lea.vmem %s1098_s26, 16  ;;  %p1455_p13 = scmp.lt.s32.totalorder %s1098_s26, %s1453_s15 }
 0x113   : > { %p1449_p10 = scmp.ne.s32.totalorder %s1098_s26, %s1448_s3  ;;  %p1456_p0 = scmp.lt.s32.totalorder %s1454_s4, %s1448_s3 }
 0x115   : > { %p1450_p11 = pnand %p1449_p10, %p1625_p5  ;;  %p1457_p1 = por %p1456_p0, %p1455_p13 }
 0x117   : > { %p1451_p12 = pneg %p1450_p11 }
 0x119   : > { %p1458_p2 = pnand %p1457_p1, %p1451_p12 }
 0x183   : > { %v528_v10 = vpop.permute.xlu0 %527 }
 0x184   : > { %v533_v11 = vsel %vm481_vm1, %v528_v10, 0 }
 0x185   : > { %1290 = vmatpush3.bf16.xpose.msra.mxu1 %v533_v11 }
 0x186   : > { %1301 = vmatprep.subr.bf16.mxu1 %v1517_v1 }
 0x18c   : > { %1292 = vmatmul.mubr.msk.bf16.vlgmr.msra.gmra.mrb[0].mxu1 %vm481_vm1, %v525_v6 }
 0x18d   : > { %1305 = vmatprep.mubr.msk.bf16.mxu1 %vm1518_vm0, %v1517_v1  ;;  %1302 = vmatpush3.bf16.msra.mxu1 %v1401_v31 }
 0x18e   : > { %1303 = vmatprep.subr.bf16.mxu1 %v1517_v1 }
 0x191   : > { %1304 = vmatpush3.bf16.msra.mxu1 %v1402_v32 }
 0x192   : > { %1317 = vmatprep.subr.bf16.mxu1 %v1517_v1 }
 0x25f   : > { %v569_v19 = vpop.f32.mrb[0].mxu1 }
 0x260   : > { %v575_v20 = vmul.f32 0.17677669, %v569_v19  ;;  %v1293_v21 = vpop.f32.mrb[1].mxu1 }
 0x261   : > { %v572_v22 = vpop.f32.mrb[2].mxu1 }
 0x262   : > { %v1294_v23 = vpop.f32.mrb[3].mxu1  ;;  %v585_v24 = vadd.f32 %v583_v18, %v575_v20 }
 0x264   : > { %v587_v25 = vsel %vm586_vm2, %v585_v24, -inf }
 0x265   : > { %588 = vmax.xlane.f32.xlu0 %v587_v25  ;;  %v1239_v25 = vld [vmem:[%s1864_s9 + $0x1] ss:$0 sm:$0xff] }
 0x2f2   : > { %v589_v26 = vpop.xlane.xlu0 %588 }
 0x2f3   : > { %v590_v27 = vsub.f32 %v585_v24, %v589_v26 }
 0x2f5   : > { %v591_v28 = vmul.f32 1.442695, %v590_v27 }
 0x2f7   : > { %1413 = vpow2.f32 %v591_v28 }
 0x301   : > { %v1414_v29 = vpop.eup %1413 }
 0x302   : > { %v593_v30 = vsel %vm586_vm2, %v1414_v29, 0.0 }
 0x303   : > { %594 = vadd.xlane.f32.xlu1 %v593_v30 }
 0x314   : > { %599 = vrot.lane.b32.xlu1 %v525_v6, %s1520_s17  ;;  %v1407_v6 = vld [vmem:[%s1861_s6 + $0x10] sm:$0xff]   ;;  %s452_s17 = scalar_lea.vmem %s1867_s12, %s1668_s16 }
 0x390   : > { %v595_v33 = vpop.xlane.xlu1 %594 }
 0x391   : > { %1415 = vrcp.f32 %v595_v33 }
 0x394   : > { %v600_v34 = vpop.permute.xlu1 %599 }
 0x395   : > { %v606_v35 = vsel %vm604_vm3, %v600_v34, 0 }
 0x396   : > { %1296 = vmatpush3.bf16.msra.mxu0 %v606_v35 }
 0x397   : > { %1309 = vmatprep.subr.bf16.mxu0 %v1517_v1 }
 0x39b   : > { %v1416_v36 = vpop.eup %1415 }
 0x39c   : > { %v597_v37 = vmul.f32 %v1416_v36, %v1414_v29 }
 0x39e   : > { %v598_v38 = vpack.c.bf16 %v597_v37, %v597_v37 }
 0x3a0   : > { %1298 = vmatmul.mubr.msk.bf16.vlgmr.msra.gmra.mrb[4].mxu0 %vm586_vm2, %v598_v38  ;;  %v1409_v38 = vld [vmem:[%s1862_s7] sm:$0xff]  }
 0x3a1   : > { %1313 = vmatprep.mubr.msk.bf16.mxu0 %vm1518_vm0, %v1517_v1  ;;  %1310 = vmatpush3.bf16.msra.mxu0 %v1403_v55 }
 0x3a2   : > { %1311 = vmatprep.subr.bf16.mxu0 %v1517_v1 }
 0x3a5   : > { %1312 = vmatpush3.bf16.msra.mxu0 %v1404_v56 }
 0x3a6   : > { %1329 = vmatprep.subr.bf16.mxu0 %v1517_v1 }
 0x473   : > { %v642_v39 = vpop.f32.mrb[4].mxu0 }
 0x474   : > { %v652_v40 = vpack.c.bf16 %v642_v39, %v642_v39  ;;  %v1299_v41 = vpop.f32.mrb[5].mxu0  ;;  %v1410_v39 = vld [vmem:[%s1862_s7 + $0x8] sm:$0xff]  }
 0x475   : > { %v645_v42 = vpop.f32.mrb[6].mxu0 }
 0x476   : > { %v1300_v43 = vpop.f32.mrb[7].mxu0  ;;  %1306 = vmatmul.mubr.msk.bf16.vlgmr.msra.gmra.mrb[4].mxu1 %vm481_vm1, %v652_v40 }
 0x477   : > { %1325 = vmatprep.mubr.msk.bf16.mxu1 %vm1518_vm0, %v1517_v1  ;;  %1318 = vmatpush3.bf16.msra.mxu1 %v1405_v4 }
 0x478   : > { %1319 = vmatprep.subr.bf16.mxu1 %v1517_v1 }
 0x47b   : > { %1320 = vmatpush3.bf16.msra.mxu1 %v1406_v5 }
 0x47c   : > { %1321 = vmatprep.subr.bf16.mxu1 %v1517_v1 }
 0x47f   : > { %1322 = vmatpush3.bf16.msra.mxu1 %v1407_v6 }
 0x480   : > { %1323 = vmatprep.subr.bf16.mxu1 %v1517_v1 }
 0x483   : > { %1324 = vmatpush3.bf16.msra.mxu1 %v1408_v7 }
 0x549   : > { %v702_v44 = vpop.f32.mrb[4].mxu1 }
 0x54a   : > { %v708_v45 = vadd.f32 %v702_v44, %v1675_v3  ;;  %v1307_v46 = vpop.f32.mrb[5].mxu1  ;;  %v1245_v44 = vld [vmem:[%s1864_s9 + $0x4] ss:$0 sm:$0xff] }
 0x54b   : > { %v705_v47 = vpop.f32.mrb[6].mxu1  ;;  %v1246_v46 = vld [vmem:[%s1864_s9 + $0x5] ss:$0 sm:$0xff] }
 0x54c   : > { %v1308_v48 = vpop.f32.mrb[7].mxu1  ;;  %v709_v49 = vsel %vm481_vm1, %v708_v45, 0.0 }
 0x54d   : > { %710 = vadd.xlane.f32.xlu1 %v709_v49 }
 0x5da   : > { %v711_v50 = vpop.xlane.xlu1 %710 }
 0x5db   : > { %v713_v51 = vmul.f32 0.03125, %v711_v50  ;;  %v1411_v50 = vld [vmem:[%s1863_s8] sm:$0xff]  }
 0x5dd   : > { %v714_v52 = vsub.f32 %v708_v45, %v713_v51  ;;  %v1412_v51 = vld [vmem:[%s1863_s8 + $0x8] sm:$0xff]  }
 0x5df   : > { %v715_v53 = vmul.f32 %v714_v52, %v714_v52 }
 0x5e1   : > { %v716_v54 = vsel %vm481_vm1, %v715_v53, 0.0 }
 0x5e2   : > { %717 = vadd.xlane.f32.xlu0 %v716_v54 }
 0x66f   : > { %v718_v57 = vpop.xlane.xlu0 %717 }
 0x670   : > { %v719_v58 = vmul.f32 0.03125, %v718_v57 }
 0x672   : > { %v720_v59 = vadd.f32 1e-05, %v719_v58 }
 0x674   : > { %1417 = vrsqrt.f32 %v720_v59 }
 0x67e   : > { %v1418_v60 = vpop.eup %1417 }
 0x67f   : > { %v722_v62 = vmul.f32 %v1418_v60, %v714_v52  ;;  %v460_v52 = vld [vmem:[%s1864_s9 + $0x6] sm:$0x1]  ;;  %v461_v60 = vld [vmem:[%s1864_s9 + $0x7] sm:$0x1] }
 0x681   : > { %v727_v0 = vmul.f32 %v1233_v61, %v722_v62 }
 0x683   : > { %v732_v2 = vadd.f32 %v1234_v63, %v727_v0 }
 0x685   : > { %v737_v3 = vpack.c.bf16 %v732_v2, %v732_v2 }
 0x687   : > { %1314 = vmatmul.mubr.msk.bf16.vlgmr.msra.gmra.mrb[8].mxu0 %vm481_vm1, %v737_v3 }
 0x688   : > { %1333 = vmatprep.mubr.msk.bf16.mxu0 %vm1518_vm0, %v1517_v1  ;;  %1330 = vmatpush3.bf16.msra.mxu0 %v1409_v38 }
 0x689   : > { %1331 = vmatprep.subr.bf16.mxu0 %v1517_v1 }
 0x68c   : > { %1332 = vmatpush3.bf16.msra.mxu0 %v1410_v39 }
 0x68d   : > { %1337 = vmatprep.subr.bf16.mxu0 %v1517_v1 }
 0x75a   : > { %v791_v9 = vpop.f32.mrb[8].mxu0 }
 0x75b   : > { %v792_v10 = vadd.f32 %v1235_v8, %v791_v9  ;;  %v1315_v11 = vpop.f32.mrb[9].mxu0 }
 0x75c   : > { %v794_v13 = vpop.f32.mrb[10].mxu0 }
 0x75d   : > { %v798_v14 = vmul.f32 0.044715, %v792_v10  ;;  %v1316_v15 = vpop.f32.mrb[11].mxu0  ;;  %v797_v21 = vmul.f32 0.5, %v792_v10 }
 0x75f   : > { %v799_v16 = vmul.f32 %v798_v14, %v792_v10 }
 0x761   : > { %v800_v17 = vmul.f32 %v799_v16, %v792_v10 }
 0x763   : > { %v801_v18 = vadd.f32 %v800_v17, %v792_v10 }
 0x765   : > { %v802_v19 = vmul.f32 0.7978846, %v801_v18 }
 0x767   : > { %1419 = vtanh.f32 %v802_v19  ;;  %v1060_v19 = vand.u32 127, %v580_v12 }
 0x771   : > { %v1420_v20 = vpop.eup %1419 }
 0x772   : > { %v804_v22 = vadd.f32 1.0, %v1420_v20  ;;  %v1061_v20 = vstv %s1058_s20  ;;  %s1254_s20 = sshll.u32 %s1608_s25, 4 }
 0x773   : > { %vm1062_vm6 = vcmp.eq.s32.totalorder %v1060_v19, %v1061_v20  ;;  %s1812_s0 = scalar_lea.hbm %s1865_s10, %s1254_s20 }
 0x774   : > { %v805_v23 = vmul.f32 %v804_v22, %v797_v21  ;;  %v1253_v21 = vsel %vm1062_vm6, 1.0, %v1517_v1  ;;  %v462_v22 = vld [vmem:[%s1864_s9 + $0x8] sm:$0x1] }
 0x776   : > { %v814_v24 = vpack.c.bf16 %v805_v23, %v805_v23  ;;  %v1070_v23 = vmul.f32 %v1253_v21, %v462_v22 }
 0x778   : > { %1326 = vmatmul.mubr.msk.bf16.vlgmr.msra.gmra.mrb[8].mxu1 %vm843_vm4, %v814_v24  ;;  %v1071_v24 = vsel %vm1032_vm5, %v1070_v23, 0.0 }
 0x84b   : > { %v881_v26 = vpop.f32.mrb[8].mxu1 }
 0x84c   : > { %v882_v27 = vadd.f32 %v1239_v25, %v881_v26  ;;  %v1327_v28 = vpop.f32.mrb[9].mxu1 }
 0x84d   : > { %v884_v29 = vpop.f32.mrb[10].mxu1 }
 0x84e   : > { %v1328_v30 = vpop.f32.mrb[11].mxu1  ;;  %v887_v31 = vadd.f32 %v882_v27, %v732_v2 }
 0x850   : > { %v888_v32 = vsel %vm481_vm1, %v887_v31, 0.0 }
 0x851   : > { %889 = vadd.xlane.f32.xlu0 %v888_v32 }
 0x8de   : > { %v890_v33 = vpop.xlane.xlu0 %889 }
 0x8df   : > { %v891_v34 = vmul.f32 0.03125, %v890_v33 }
 0x8e1   : > { %v892_v35 = vsub.f32 %v887_v31, %v891_v34 }
 0x8e3   : > { %v893_v36 = vmul.f32 %v892_v35, %v892_v35 }
 0x8e5   : > { %v894_v37 = vsel %vm481_vm1, %v893_v36, 0.0 }
 0x8e6   : > { %895 = vadd.xlane.f32.xlu0 %v894_v37 }
 0x973   : > { %v896_v40 = vpop.xlane.xlu0 %895 }
 0x974   : > { %v897_v41 = vmul.f32 0.03125, %v896_v40 }
 0x976   : > { %v898_v42 = vadd.f32 1e-05, %v897_v41 }
 0x978   : > { %1421 = vrsqrt.f32 %v898_v42 }
 0x982   : > { %v1422_v43 = vpop.eup %1421 }
 0x983   : > { %v900_v45 = vmul.f32 %v1422_v43, %v892_v35 }
 0x985   : > { %v905_v47 = vmul.f32 %v1245_v44, %v900_v45 }
 0x987   : > { %v910_v48 = vadd.f32 %v1246_v46, %v905_v47 }
 0x989   : > { %v915_v49 = vpack.c.bf16 %v910_v48, %v910_v48 }
 0x98b   : > { %1334 = vmatmul.mubr.msk.bf16.vlgmr.msra.gmra.mrb[12].mxu0 %vm481_vm1, %v915_v49 }
 0x98c   : > { %1341 = vmatprep.mubr.msk.bf16.mxu0 %vm1518_vm0, %v1517_v1  ;;  %1338 = vmatpush3.bf16.msra.mxu0 %v1411_v50 }
 0x98d   : > { %1339 = vmatprep.subr.bf16.mxu0 %v1517_v1 }
 0x990   : > { %1340 = vmatpush3.bf16.msra.mxu0 %v1412_v51 }
 0xa5e   : > { %v965_v53 = vpop.f32.mrb[12].mxu0 }
 0xa5f   : > { %v966_v54 = vadd.f32 %v965_v53, %v460_v52  ;;  %v1335_v55 = vpop.f32.mrb[13].mxu0 }
 0xa60   : > { %v968_v56 = vpop.f32.mrb[14].mxu0 }
 0xa61   : > { %1423 = vtanh.f32 %v966_v54  ;;  %v1336_v57 = vpop.f32.mrb[15].mxu0 }
 0xa6b   : > { %v1424_v58 = vpop.eup %1423 }
 0xa6c   : > { %v976_v59 = vpack.c.bf16 %v1424_v58, %v1424_v58 }
 0xa6e   : > { %1342 = vmatmul.mubr.msk.bf16.vlgmr.msra.gmra.mrb[16].mxu0 %vm481_vm1, %v976_v59 }
 0xb41   : > { %v1026_v61 = vpop.f32.mrb[16].mxu0 }
 0xb42   : > { %v1027_v62 = vadd.f32 %v1026_v61, %v461_v60  ;;  %v1343_v63 = vpop.f32.mrb[17].mxu0 }
 0xb43   : > { %v1029_v0 = vpop.f32.mrb[18].mxu0 }
 0xb44   : > { %v1344_v2 = vpop.f32.mrb[19].mxu0  ;;  %v1033_v3 = vsel %vm1032_vm5, %v1027_v62, -inf }
 0xb45   : > { %1034 = vmax.xlane.f32.xlu0 %v1033_v3 }
 0xbd2   : > { %v1035_v4 = vpop.xlane.xlu0 %1034 }
 0xbd3   : > { %v1036_v5 = vsub.f32 %v1027_v62, %v1035_v4 }
 0xbd5   : > { %v1037_v6 = vmul.f32 1.442695, %v1036_v5 }
 0xbd7   : > { %1425 = vpow2.f32 %v1037_v6 }
 0xbe1   : > { %v1426_v7 = vpop.eup %1425 }
 0xbe2   : > { %v1039_v8 = vsel %vm1032_vm5, %v1426_v7, 0.0 }
 0xbe3   : > { %1040 = vadd.xlane.f32.xlu0 %v1039_v8 }
 0xc70   : > { %v1041_v9 = vpop.xlane.xlu0 %1040 }
 0xc71   : > { %1427 = vrcp.f32 %v1041_v9 }
 0xc7b   : > { %v1428_v10 = vpop.eup %1427 }
 0xc7c   : > { %v1043_v11 = vmul.f32 %v1428_v10, %v1426_v7 }
 0xc7e   : > { %v1045_v13 = vsel %vm1032_vm5, %v1043_v11, -inf  ;;  %1044 = vst.msk [vmem:[%s1789_s19] sm:$0x1] %vm1032_vm5, %v1043_v11 }
 0xc7f   : > { %1046 = vmax.xlane.f32.xlu0 %v1045_v13 }
 0xd0c   : > { %v1047_v14 = vpop.xlane.xlu0 %1046 }
 0xd0d   : > { %v1048_v15 = vsub.f32 %v1043_v11, %v1047_v14 }
 0xd0f   : > { %v1049_v16 = vmul.f32 1.442695, %v1048_v15 }
 0xd11   : > { %1429 = vpow2.f32 %v1049_v16 }
 0xd1b   : > { %v1430_v17 = vpop.eup %1429 }
 0xd1c   : > { %v1051_v18 = vsel %vm1032_vm5, %v1430_v17, 0.0 }
 0xd1d   : > { %1052 = vadd.xlane.f32.xlu1 %v1051_v18 }
 0xd21   : > { %1072 = vadd.xlane.f32.xlu1 %v1071_v24 }
 0xdaa   : > { %v1053_v25 = vpop.xlane.xlu1 %1052 }
 0xdab   : > { %1431 = vlog2.f32 %v1053_v25 }
 0xdae   : > { %v1073_v30 = vpop.xlane.xlu1 %1072 }
 0xdaf   : > { %1077 = vst.msk [vmem:[%s452_s17] sm:$0x1] %vm1075_vm7, %v1073_v30 }
 0xdb5   : > { %v1432_v26 = vpop.eup %1431 }
 0xdb6   : > { %v1055_v12 = vmul.f32 0.6931472, %v1432_v26 }
 0xdb8   : > { %v1056_v27 = vadd.f32 %v1055_v12, %v1047_v14 }
 0xdba   : > { %v1057_v28 = vsub.f32 %v1043_v11, %v1056_v27 }
 0xdbc   : > { %v1065_v29 = vmul.f32 %v1253_v21, %v1057_v28 }
 0xdbe   : > { %v1066_v1 = vsel %vm1032_vm5, %v1065_v29, 0.0 }
 0xdbf   : > { %1067 = vadd.xlane.f32.xlu0 %v1066_v1 }
 0xdc0   : > { %1461 = shalt.err (!%p1458_p2)
}
 0xdc1   : > { %s1462_s1 = scalar_lea.hbm %s1812_s0, 16  ;;  %s1466_s19 = scalar_lea.hbm %s1865_s10, 32 }
 0xdc2   : > { %p1463_p3 = scmp.ne.s32.totalorder %s1812_s0, %s1462_s1  ;;  %p1467_p8 = scmp.lt.u32.totalorder %s1812_s0, %s1865_s10 }
 0xdc3   : > { %p1468_p9 = scmp.lt.u32.totalorder %s1466_s19, %s1462_s1  ;;  %p1470_p11 = scmp.lt.u32.totalorder %s1462_s1, %s1812_s0 }
 0xdc4   : > { %p1464_p4 = pnand %p1463_p3, %p1625_p5 }
 0xdc5   : > { %p1469_p10 = por %p1468_p9, %p1467_p8 }
 0xdc6   : > { %p1465_p7 = pneg %p1464_p4 }
 0xdc7   : > { %p1471_p12 = por %p1470_p11, %p1469_p10 }
 0xdc9   : > { %p1472_p13 = pnand %p1471_p12, %p1465_p7 }
 0xdcb   : > { %1475 = shalt.err (!%p1472_p13)
}
 0xdcc   : > { %1349 = dma.vmem_to_hbm [thread:$0]  (%p1625_p5), %s1098_s26, 16, %s1812_s0, %s1079_s2  }
 0xdcd   : > { %s449_s28 = scalar_lea.vmem %s1866_s11, %s1668_s16 }
 0xe4c   : > { %v1068_v31 = vpop.xlane.xlu0 %1067 }
 0xe4d   : > { %v1069_v32 = vsub.f32 0.0, %v1068_v31 }
 0xe4f   : > { %v1074_v33 = vmul.f32 %v1073_v30, %v1069_v32 }
 0xe51   : > { %1076 = vst.msk [vmem:[%s449_s28] sm:$0x1] %vm1075_vm7, %v1074_v33 }
 0xe52 PF: > { %p1361_p0 = scmp.ge.s32.totalorder %s1514_s24, 2  ;;  %s1115_s29 = sand.u32 1, %s1502_s21  }
 0xe53   : > { %s1116_s13 = scalar_lea.sflag [#allocation3], %s1115_s29 }
 0xe54   : > { %p1356_p1 = pnand %p1361_p0, %p1629_p6 }
 0xe56   : > { %1497 = dma.done.wait (!%p1356_p1), %s1116_s13, 16  }
 0xe57   : > { %1499 = vsyncadd (!%p1356_p1), %s1116_s13, 4294967280  ;;  %p24_p5 = scmp.ge.s32.totalorder %s1612_s27, 4   ;;  %s1883_s21 = smov %s1506_s22 }
 0xe58   : > { %s1884_s22 = smov %s1510_s23  ;;  %s1885_s23 = smov %s1623_s30 }
 0xe59   : > { %s1886_s24 = smov %s1612_s27  ;;  %26 = sbr.rel (!%p24_p5) target bundleno = 10 (0xa), region = 127 }
 0xe60   :  { %1132 = vsyncpa [#allocation3], 1 }
 0xe61   :  { %1134 = vsyncpa [#allocation3 + $0x1], 1 }
 0xe62   :  { %1135 = vsyncpa [#allocation4], 1 }
 0xe63   :  { %1137 = vsyncpa [#allocation4 + $0x1], 1 }

</bundles_post_ra>
